<compile_context>
chip_gen: v7x
topology: tpu7x:2x2x1
jax: 0.10.0
libtpu: 0.0.40
codegen_flags: <defaults>
</compile_context>

<pallas_src>
import math

import jax
import jax.numpy as jnp
from jax.experimental import pallas as pl
from jax.experimental.pallas import tpu as pltpu


_LANE = 128  # batch (lane-axis) tile granularity


def _round_up(x, m):
    return ((x + m - 1) // m) * m


def _pick_chunk(h_max):
    # Inner column-chunk width: keep (h_max, chunk) f32 intermediates within a
    # comfortable vreg budget (~16 vregs per intermediate for h_max<=64).
    if h_max <= 64:
        return 512
    if h_max <= 128:
        return 256
    return 128


def _chunk_plan(tb, chunk):
    """Static (offset, width) pairs covering [0, tb); offsets are 128-aligned."""
    plan, off = [], 0
    while off < tb:
        width = min(chunk, tb - off)
        plan.append((off, width))
        off += width
    return tuple(plan)


def _pick_batch_tile(batch, max_batch_tile):
    """Returns (tile, padded_batch) with tile % 128 == 0, padded_batch % tile == 0.

    Tile is as large as possible (amortizes per-step overhead) while keeping
    >= 2 grid steps when B > 128 (v7x megacore) and wasting at most ~128
    padded columns per grid step.
    """
    cap = max(_LANE, (int(max_batch_tile) // _LANE) * _LANE)
    b_ceil = _round_up(batch, _LANE)
    n_steps = max(-(-b_ceil // cap), 2 if b_ceil > _LANE else 1)
    tb = _round_up(-(-b_ceil // n_steps), _LANE)
    return tb, n_steps * tb


def _make_mlp_kernel(chunks):
    def kernel(x_ref, w1_ref, b1_ref, w2_ref, b2_ref, w3_ref, b3_ref, o_ref):
        # Feature-major (batch on the 128-lane axis):
        #   x_ref : (obs_dim, TB)     wN_ref: (out_N, in_N)
        #   bN_ref: (out_N, 1)        o_ref : (out_dim, TB)
        w1 = w1_ref[...]
        w2 = w2_ref[...]
        w3 = w3_ref[...]
        b1 = b1_ref[...]
        b2 = b2_ref[...]
        b3 = b3_ref[...]
        # Static unroll over 128-aligned column chunks: all three layers are
        # computed per chunk so hidden activations never spill to VMEM.
        for c0, cw in chunks:
            xc = x_ref[:, c0:c0 + cw]
            h = jnp.dot(w1, xc, preferred_element_type=jnp.float32) + b1
            h = jnp.maximum(h, 0.0).astype(w2.dtype)
            h = jnp.dot(w2, h, preferred_element_type=jnp.float32) + b2
            h = jnp.maximum(h, 0.0).astype(w3.dtype)
            o = jnp.dot(w3, h, preferred_element_type=jnp.float32) + b3
            o_ref[:, c0:c0 + cw] = o.astype(o_ref.dtype)

    return kernel


def state_value_n_costate_forward_t(obs_t, params, *, max_batch_tile=32768):
    """Fast path (feature-major): obs_t (obs_dim, B) -> (1 + obs_dim, B).

    Zero wrapper-side layout copies when B is a multiple of the chosen tile.
    """
    obs_dim, batch = obs_t.shape
    dt = obs_t.dtype

    # Tiny (<= 5 KiB) parameter repack; resident in VMEM inside the kernel.
    w1t = jnp.asarray(params["w1"], dt).T              # (h1, obs_dim)
    w2t = jnp.asarray(params["w2"], dt).T              # (h2, h1)
    w3t = jnp.asarray(params["w3"], dt).T              # (out, h2)
    b1t = jnp.asarray(params["b1"], jnp.float32).reshape(-1, 1)
    b2t = jnp.asarray(params["b2"], jnp.float32).reshape(-1, 1)
    b3t = jnp.asarray(params["b3"], jnp.float32).reshape(-1, 1)
    h1_dim, h2_dim, out_dim = w1t.shape[0], w2t.shape[0], w3t.shape[0]

    tb, b_pad = _pick_batch_tile(batch, max_batch_tile)
    grid = (b_pad // tb,)
    chunks = _chunk_plan(tb, _pick_chunk(max(h1_dim, h2_dim)))

    x_t = obs_t if b_pad == batch else jnp.pad(obs_t, ((0, 0), (0, b_pad - batch)))

    def resident(shape):
        # Block index never changes -> array stays resident in VMEM.
        return pl.BlockSpec(shape, lambda i: (0, 0))

    out_t = pl.pallas_call(
        _make_mlp_kernel(chunks),
        out_shape=jax.ShapeDtypeStruct((out_dim, b_pad), dt),
        grid=grid,
        in_specs=[
            pl.BlockSpec((obs_dim, tb), lambda i: (0, i)),  # batch tiled on lanes
            resident((h1_dim, obs_dim)),
            resident((h1_dim, 1)),
            resident((h2_dim, h1_dim)),
            resident((h2_dim, 1)),
            resident((out_dim, h2_dim)),
            resident((out_dim, 1)),
        ],
        out_specs=pl.BlockSpec((out_dim, tb), lambda i: (0, i)),
        compiler_params=pltpu.CompilerParams(
            dimension_semantics=("parallel",),
        ),
    )(x_t, w1t, b1t, w2t, b2t, w3t, b3t)

    return out_t if b_pad == batch else out_t[:, :batch]


def state_value_n_costate_forward(obs, params, *, max_batch_tile=32768):
    """Module-compatible API: obs (B, obs_dim) -> (B, 1 + obs_dim)."""
    obs = jnp.asarray(obs)
    out_t = state_value_n_costate_forward_t(obs.T, params, max_batch_tile=max_batch_tile)
    out = out_t.T
    # torch.squeeze(v, -1): no-op because the last dim is 1 + obs_dim > 1.
    return jnp.squeeze(out, -1) if out.shape[-1] == 1 else out


def init_params(key, sizes):
    """Deterministic init matching init_weights(): uniform(+-sqrt(6/(fi+fo))), bias=0."""
    params = {}
    keys = jax.random.split(key, len(sizes) - 1)
    for j in range(len(sizes) - 1):
        fan_in, fan_out = sizes[j], sizes[j + 1]
        w_bound = math.sqrt(6.0 / (fan_in + fan_out))
        w = jax.random.uniform(
            keys[j], (fan_in, fan_out), jnp.float32, minval=-w_bound, maxval=w_bound
        )
        b = jnp.zeros((1, fan_out), jnp.float32)
        params[f"w{j + 1}"] = w
        params[f"b{j + 1}"] = b
    return params


def reference_forward(obs, params):
    h = jnp.maximum(obs @ params["w1"] + params["b1"], 0.0)
    h = jnp.maximum(h @ params["w2"] + params["b2"], 0.0)
    o = h @ params["w3"] + params["b3"]
    return jnp.squeeze(o, -1) if o.shape[-1] == 1 else o


if __name__ == "__main__":
    # Small shapes consistent with the module's constructor.
    obs_dim = 4
    hidden_sizes = (32, 32)
    batch = 2
    sizes = [obs_dim] + list(hidden_sizes) + [1 + obs_dim]

    key = jax.random.PRNGKey(0)
    k_param, k_obs = jax.random.split(key)
    params = init_params(k_param, sizes)
    obs = jax.random.normal(k_obs, (batch, obs_dim), jnp.float32)

    out = jax.block_until_ready(state_value_n_costate_forward(obs, params))
    ref = reference_forward(obs, params)
    assert out.shape == (batch, 1 + obs_dim), out.shape
    assert jnp.allclose(out, ref, atol=1e-5, rtol=1e-5), "mismatch vs JAX reference"

    # Ragged batch that spans two grid steps and two inner column chunks.
    big_batch = 1500
    obs_big = jax.random.normal(jax.random.PRNGKey(1), (big_batch, obs_dim), jnp.float32)
    out_big = jax.block_until_ready(state_value_n_costate_forward(obs_big, params))
    ref_big = reference_forward(obs_big, params)
    assert out_big.shape == (big_batch, 1 + obs_dim), out_big.shape
    assert jnp.allclose(out_big, ref_big, atol=1e-4, rtol=1e-4), "mismatch (large batch)"

    print("KERNEL_OK")
</pallas_src>

<mosaic_0001>
module attributes {stable_mosaic.version = 11 : i64} {
  func.func @kernel(%arg0: i32, %arg1: memref<4x128xf32, #tpu.memory_space<vmem>>, %arg2: memref<32x4xf32, #tpu.memory_space<vmem>>, %arg3: memref<32x1xf32, #tpu.memory_space<vmem>>, %arg4: memref<32x32xf32, #tpu.memory_space<vmem>>, %arg5: memref<32x1xf32, #tpu.memory_space<vmem>>, %arg6: memref<5x32xf32, #tpu.memory_space<vmem>>, %arg7: memref<5x1xf32, #tpu.memory_space<vmem>>, %arg8: memref<5x128xf32, #tpu.memory_space<vmem>>) attributes {dimension_semantics = [#tpu.dimension_semantics<parallel>], iteration_bounds = array<i64: 1>, scalar_prefetch = 0 : i64, scratch_operands = 0 : i64, tpu.core_type = #tpu.core_type<tc>, window_params = [{transform_indices = @transform_0, window_bounds = array<i64: 4, 128>}, {pipeline_mode = #tpu.pipeline_mode<synchronous>, transform_indices = @transform_1, window_bounds = array<i64: 32, 4>}, {pipeline_mode = #tpu.pipeline_mode<synchronous>, transform_indices = @transform_2, window_bounds = array<i64: 32, 1>}, {pipeline_mode = #tpu.pipeline_mode<synchronous>, transform_indices = @transform_3, window_bounds = array<i64: 32, 32>}, {pipeline_mode = #tpu.pipeline_mode<synchronous>, transform_indices = @transform_4, window_bounds = array<i64: 32, 1>}, {pipeline_mode = #tpu.pipeline_mode<synchronous>, transform_indices = @transform_5, window_bounds = array<i64: 5, 32>}, {pipeline_mode = #tpu.pipeline_mode<synchronous>, transform_indices = @transform_6, window_bounds = array<i64: 5, 1>}, {transform_indices = @transform_7, window_bounds = array<i64: 5, 128>}]} {
    %c0 = arith.constant 0 : index
    %c0_0 = arith.constant 0 : index
    %0 = vector.load %arg2[%c0, %c0_0] : memref<32x4xf32, #tpu.memory_space<vmem>>, vector<32x4xf32>
    %c0_1 = arith.constant 0 : index
    %c0_2 = arith.constant 0 : index
    %1 = vector.load %arg4[%c0_1, %c0_2] : memref<32x32xf32, #tpu.memory_space<vmem>>, vector<32x32xf32>
    %c0_3 = arith.constant 0 : index
    %c0_4 = arith.constant 0 : index
    %2 = vector.load %arg6[%c0_3, %c0_4] : memref<5x32xf32, #tpu.memory_space<vmem>>, vector<5x32xf32>
    %c0_5 = arith.constant 0 : index
    %c0_6 = arith.constant 0 : index
    %3 = vector.load %arg3[%c0_5, %c0_6] : memref<32x1xf32, #tpu.memory_space<vmem>>, vector<32x1xf32>
    %c0_7 = arith.constant 0 : index
    %c0_8 = arith.constant 0 : index
    %4 = vector.load %arg5[%c0_7, %c0_8] : memref<32x1xf32, #tpu.memory_space<vmem>>, vector<32x1xf32>
    %c0_9 = arith.constant 0 : index
    %c0_10 = arith.constant 0 : index
    %5 = vector.load %arg7[%c0_9, %c0_10] : memref<5x1xf32, #tpu.memory_space<vmem>>, vector<5x1xf32>
    %c0_11 = arith.constant 0 : index
    %c0_12 = arith.constant 0 : index
    %6 = vector.load %arg1[%c0_11, %c0_12] : memref<4x128xf32, #tpu.memory_space<vmem>>, vector<4x128xf32>
    %cst = arith.constant dense<0.000000e+00> : vector<32x128xf32>
    %7 = tpu.matmul %0, %6, %cst {dimension_numbers = #tpu.dot_dimension_numbers<[1], [0], [0], [1], [0, 0, 1, 1], [], []>} : vector<32x4xf32>, vector<4x128xf32>, vector<32x128xf32> -> vector<32x128xf32>
    %8 = vector.broadcast %3 : vector<32x1xf32> to vector<32x128xf32>
    %9 = arith.addf %7, %8 : vector<32x128xf32>
    %cst_13 = arith.constant 0.000000e+00 : f32
    %10 = vector.broadcast %cst_13 : f32 to vector<32x128xf32>
    %11 = arith.maximumf %9, %10 : vector<32x128xf32>
    %cst_14 = arith.constant dense<0.000000e+00> : vector<32x128xf32>
    %12 = tpu.matmul %1, %11, %cst_14 {dimension_numbers = #tpu.dot_dimension_numbers<[1], [0], [0], [1], [0, 0, 1, 1], [], []>} : vector<32x32xf32>, vector<32x128xf32>, vector<32x128xf32> -> vector<32x128xf32>
    %13 = vector.broadcast %4 : vector<32x1xf32> to vector<32x128xf32>
    %14 = arith.addf %12, %13 : vector<32x128xf32>
    %cst_15 = arith.constant 0.000000e+00 : f32
    %15 = vector.broadcast %cst_15 : f32 to vector<32x128xf32>
    %16 = arith.maximumf %14, %15 : vector<32x128xf32>
    %cst_16 = arith.constant dense<0.000000e+00> : vector<5x128xf32>
    %17 = tpu.matmul %2, %16, %cst_16 {dimension_numbers = #tpu.dot_dimension_numbers<[1], [0], [0], [1], [0, 0, 1, 1], [], []>} : vector<5x32xf32>, vector<32x128xf32>, vector<5x128xf32> -> vector<5x128xf32>
    %18 = vector.broadcast %5 : vector<5x1xf32> to vector<5x128xf32>
    %19 = arith.addf %17, %18 : vector<5x128xf32>
    %c0_17 = arith.constant 0 : index
    %c0_18 = arith.constant 0 : index
    %20 = vector.load %arg8[%c0_17, %c0_18] : memref<5x128xf32, #tpu.memory_space<vmem>>, vector<5x128xf32>
    tpu.vector_store %arg8[%c0_17, %c0_18], %19 {strides = array<i32>} : memref<5x128xf32, #tpu.memory_space<vmem>>, vector<5x128xf32>,
    return
  }
  func.func @transform_0(%arg0: i32) -> (i32, i32) {
    %c0_i32 = arith.constant 0 : i32
    %c0_i32_0 = arith.constant 0 : i32
    return %c0_i32, %arg0 : i32, i32
  }
  func.func @transform_1(%arg0: i32) -> (i32, i32) {
    %c0_i32 = arith.constant 0 : i32
    %c0_i32_0 = arith.constant 0 : i32
    %c0_i32_1 = arith.constant 0 : i32
    return %c0_i32, %c0_i32_0 : i32, i32
  }
  func.func @transform_2(%arg0: i32) -> (i32, i32) {
    %c0_i32 = arith.constant 0 : i32
    %c0_i32_0 = arith.constant 0 : i32
    %c0_i32_1 = arith.constant 0 : i32
    return %c0_i32, %c0_i32_0 : i32, i32
  }
  func.func @transform_3(%arg0: i32) -> (i32, i32) {
    %c0_i32 = arith.constant 0 : i32
    %c0_i32_0 = arith.constant 0 : i32
    %c0_i32_1 = arith.constant 0 : i32
    return %c0_i32, %c0_i32_0 : i32, i32
  }
  func.func @transform_4(%arg0: i32) -> (i32, i32) {
    %c0_i32 = arith.constant 0 : i32
    %c0_i32_0 = arith.constant 0 : i32
    %c0_i32_1 = arith.constant 0 : i32
    return %c0_i32, %c0_i32_0 : i32, i32
  }
  func.func @transform_5(%arg0: i32) -> (i32, i32) {
    %c0_i32 = arith.constant 0 : i32
    %c0_i32_0 = arith.constant 0 : i32
    %c0_i32_1 = arith.constant 0 : i32
    return %c0_i32, %c0_i32_0 : i32, i32
  }
  func.func @transform_6(%arg0: i32) -> (i32, i32) {
    %c0_i32 = arith.constant 0 : i32
    %c0_i32_0 = arith.constant 0 : i32
    %c0_i32_1 = arith.constant 0 : i32
    return %c0_i32, %c0_i32_0 : i32, i32
  }
  func.func @transform_7(%arg0: i32) -> (i32, i32) {
    %c0_i32 = arith.constant 0 : i32
    %c0_i32_0 = arith.constant 0 : i32
    return %c0_i32, %arg0 : i32, i32
  }
}

</mosaic_0001>

<bundles_post_ra>
// kernel: tpu_custom_call.1
= control target key start
LH: loop header
LB: loop body
LE: loop exit
PB: predicated region body
PF: predicated region fallthrough
CT: control target
= control target key end

     0   :  { %vm79_vm0 = vcmask 1043456   ;;  %vm66_vm1 = vcmask 31744   ;;  %v493_v5 = vmov 0   ;;  %s616_s0 = inlined_call_operand.vmem [shape: f32[4,128], index: 0, kind: input, shape index: {}]   ;;  %s617_s1 = inlined_call_operand.vmem [shape: f32[32,4], index: 1, kind: input, shape index: {}]   ;;  %s618_s2 = inlined_call_operand.vmem [shape: f32[32,1], index: 2, kind: input, shape index: {}]   ;;  %s619_s3 = inlined_call_operand.vmem [shape: f32[32,32], index: 3, kind: input, shape index: {}]   ;;  %s620_s4 = inlined_call_operand.vmem [shape: f32[32,1], index: 4, kind: input, shape index: {}]   ;;  %s621_s5 = inlined_call_operand.vmem [shape: f32[5,32], index: 5, kind: input, shape index: {}]   ;;  %s622_s6 = inlined_call_operand.vmem [shape: f32[5,1], index: 6, kind: input, shape index: {}]   ;;  %s623_s7 = inlined_call_operand.hbm [shape: f32[5,128], index: 7, kind: output, shape index: {}]  }
   0x1   :  { %v45_v0 = vld [vmem:[%s616_s0] sm:$0xf]  ;;  %v28_v2 = vld [vmem:[%s617_s1 + $0x8] sm:$0xff]  ;;  %v29_v3 = vld [vmem:[%s617_s1 + $0x10] sm:$0xff]  ;;  %467 = vset.pattern.permute.xlu0 %v493_v5  ;;  %468 = vset.pattern.permute.xlu1 %v493_v5 }
   0x2   :  { %v27_v1 = vld [vmem:[%s617_s1] sm:$0xff]  ;;  %415 = vmatprep.subr.msk.mxu0 %vm79_vm0, %v45_v0  ;;  %v38_v6 = vld [vmem:[%s618_s2 + $0x10] sm:$0xff]  ;;  %v30_v7 = vld [vmem:[%s617_s1 + $0x18] sm:$0xff] }
   0x3   :  { %417 = vmatprep.mubr.msk.f32.mxu0 %vm66_vm1, %v27_v1  ;;  %v36_v4 = vld [vmem:[%s618_s2] sm:$0xff]  ;;  %416 = vmatpush3.msk.msra.mxu0 %vm79_vm0, %v45_v0  ;;  %v37_v8 = vld [vmem:[%s618_s2 + $0x8] sm:$0xff] }
   0x4   :  { %418 = vmatmul.mubr.msk.f32.vlgmr.msra.gmra.mrb[0].mxu0 %vm66_vm1, %v28_v2  ;;  %48 = vperm.xlu0 %467, %v36_v4  }
   0x5   :  { %420 = vmatprep.mubr.msk.f32.mxu0 %vm66_vm1, %v29_v3 }
   0x6   :  { %12 = vsyncpa [#allocation3], 0  ;;  %58 = vperm.xlu1 %468, %v38_v6   ;;  %v39_v9 = vld [vmem:[%s618_s2 + $0x18] sm:$0xff]  ;;  %v40_v10 = vld [vmem:[%s620_s4] sm:$0xff]  ;;  %vm192_vm2 = vcmask 261120   ;;  %v494_v37 = vmov 0.0|0.0  }
   0x7   :  { %v41_v11 = vld [vmem:[%s620_s4 + $0x8] sm:$0xff]  ;;  %v42_v12 = vld [vmem:[%s620_s4 + $0x10] sm:$0xff]  ;;  %v43_v13 = vld [vmem:[%s620_s4 + $0x18] sm:$0xff]  ;;  %456 = vmatprep.subr.bf16.mxu0 %v494_v37  ;;  %vm495_vm3 = vmmov 0   ;;  %v496_v38 = vmov 0.0   ;;  %s497_s10 = smov [#allocation2]  }
   0x8   :  { %421 = vmatmul.mubr.msk.f32.gmra.mrb[2].mxu0 %vm66_vm1, %v30_v7  ;;  %53 = vperm.xlu0 %467, %v37_v8   ;;  %v44_v14 = vld [vmem:[%s622_s6] sm:$0x1f]  ;;  %v32_v34 = vld [vmem:[%s619_s3 + $0x8] sm:$0xff]  ;;  %v33_v35 = vld [vmem:[%s619_s3 + $0x10] sm:$0xff]  ;;  %s379_s0 = sshll.u32 %s497_s10, 4  ;;  %s380_s0 = int_to_ptr.vmem [resolvable:$true] %s379_s0 }
   0x9   :  { %v31_v15 = vld [vmem:[%s619_s3] sm:$0xff]  ;;  %v34_v36 = vld [vmem:[%s619_s3 + $0x18] sm:$0xff]  ;;  %445 = vmatprep.mubr.msk.f32.mxu0 %vm495_vm3, %v496_v38  ;;  %s469_s11 = scalar_lea.vmem %s380_s0, 128  ;;  %p474_p1 = scmp.lt.s32.totalorder %s380_s0, %s380_s0 }
   0xa   :  { %63 = vperm.xlu1 %468, %v39_v9   ;;  %431 = vmatprep.mubr.msk.f32.mxu1 %vm192_vm2, %v31_v15  ;;  %v35_v57 = vld [vmem:[%s621_s5] sm:$0x1f]  ;;  %p470_p0 = scmp.ne.s32.totalorder %s380_s0, %s469_s11  ;;  %p475_p2 = scmp.lt.s32.totalorder %s469_s11, %s469_s11 }
   0xc   :  { %174 = vperm.xlu0 %467, %v40_v10   ;;  %p476_p3 = por %p475_p2, %p474_p1 }
   0xe   :  { %179 = vperm.xlu1 %468, %v41_v11   ;;  %p477_p4 = pnand %p476_p3, %p470_p0 }
  0x10   :  { %184 = vperm.xlu0 %467, %v42_v12  }
  0x12   :  { %189 = vperm.xlu1 %468, %v43_v13  }
  0x14   :  { %296 = vperm.xlu0 %467, %v44_v14  }
  0x83   :  { %v49_v16 = vpop.permute.xlu0 %48 }
  0x85   :  { %v59_v17 = vpop.permute.xlu1 %58 }
  0x87   :  { %v54_v18 = vpop.permute.xlu0 %53 }
  0x89   :  { %v64_v24 = vpop.permute.xlu1 %63 }
  0x8b   :  { %v175_v40 = vpop.permute.xlu0 %174 }
  0x8d   :  { %v180_v39 = vpop.permute.xlu1 %179 }
  0x8f   :  { %v185_v49 = vpop.permute.xlu0 %184 }
  0x91   :  { %v190_v46 = vpop.permute.xlu1 %189 }
  0x93   :  { %v297_v58 = vpop.permute.xlu0 %296 }
  0xd7   :  { %v419_v19 = vpop.f32.mrb[0].mxu0 }
  0xd8   :  { %v155_v20 = vadd.f32 %v419_v19, %v54_v18  ;;  %v149_v21 = vpop.f32.mrb[1].mxu0 }
  0xd9   :  { %v150_v22 = vadd.f32 %v149_v21, %v49_v16 }
  0xda   :  { %v169_v23 = vmax.f32 %v155_v20, 0.0 }
  0xdb   :  { %v168_v25 = vmax.f32 %v150_v22, 0.0  ;;  %v422_v26 = vpop.f32.mrb[2].mxu0 }
  0xdc   :  { %v165_v27 = vadd.f32 %v422_v26, %v64_v24  ;;  %v159_v28 = vpop.f32.mrb[3].mxu0 }
  0xdd   :  { %v160_v29 = vadd.f32 %v159_v28, %v59_v17  ;;  %v448_v30 = vpack.c.bf16 %v169_v23, %v168_v25 }
  0xde   :  { %v171_v31 = vmax.f32 %v165_v27, 0.0 }
  0xdf   :  { %v170_v32 = vmax.f32 %v160_v29, 0.0  ;;  %449 = vmatprep.subr.bf16.mxu1 %v448_v30 }
  0xe0   :  { %451 = vmatpush3.bf16.msra.mxu1 %v448_v30 }
  0xe1   :  { %v452_v33 = vpack.c.bf16 %v171_v31, %v170_v32 }
  0xe3   :  { %453 = vmatprep.subr.bf16.mxu1 %v452_v33 }
  0xe4   :  { %455 = vmatpush3.bf16.msra.mxu1 %v452_v33 }
  0xe7   :  { %432 = vmatmul.mubr.msk.f32.vlgmr.msra.gmra.mrb[0].mxu1 %vm192_vm2, %v32_v34 }
  0xe8   :  { %434 = vmatprep.mubr.msk.f32.mxu1 %vm192_vm2, %v33_v35 }
  0xeb   :  { %435 = vmatmul.mubr.msk.f32.gmra.mrb[2].mxu1 %vm192_vm2, %v34_v36 }
 0x1ba   :  { %v433_v41 = vpop.f32.mrb[0].mxu1 }
 0x1bb   :  { %v277_v42 = vadd.f32 %v433_v41, %v180_v39  ;;  %v271_v43 = vpop.f32.mrb[1].mxu1 }
 0x1bc   :  { %v272_v44 = vadd.f32 %v271_v43, %v175_v40 }
 0x1bd   :  { %v291_v45 = vmax.f32 %v277_v42, 0.0 }
 0x1be   :  { %v290_v47 = vmax.f32 %v272_v44, 0.0  ;;  %v436_v48 = vpop.f32.mrb[2].mxu1 }
 0x1bf   :  { %v287_v50 = vadd.f32 %v436_v48, %v190_v46  ;;  %v281_v51 = vpop.f32.mrb[3].mxu1 }
 0x1c0   :  { %v457_v52 = vpack.c.bf16 %v291_v45, %v290_v47  ;;  %v282_v53 = vadd.f32 %v281_v51, %v185_v49 }
 0x1c1   :  { %v293_v54 = vmax.f32 %v287_v50, 0.0 }
 0x1c2   :  { %v292_v55 = vmax.f32 %v282_v53, 0.0  ;;  %458 = vmatpush3.bf16.msra.mxu0 %v457_v52 }
 0x1c3   :  { %459 = vmatprep.subr.bf16.mxu0 %v494_v37 }
 0x1c4   :  { %v460_v56 = vpack.c.bf16 %v293_v54, %v292_v55 }
 0x1c6   :  { %461 = vmatpush3.bf16.msra.mxu0 %v460_v56 }
 0x1c9   :  { %446 = vmatmul.mubr.msk.f32.vlgmr.msra.gmra.mrb[4].mxu0 %vm192_vm2, %v35_v57 }
 0x29c   :  { %v368_v59 = vpop.f32.mrb[4].mxu0 }
 0x29d   :  { %v369_v60 = vadd.f32 %v368_v59, %v297_v58  ;;  %v447_v61 = vpop.f32.mrb[5].mxu0 }
 0x29f   :  { %372 = vst [vmem:[#allocation2] sm:$0x1f] %v369_v60 }
 0x2a0   :  { %480 = shalt.err (!%p477_p4)
}
 0x2a1   :  { %s481_s5 = scalar_lea.hbm %s623_s7, 128 }
 0x2a2   :  { %p482_p5 = scmp.ne.s32.totalorder %s623_s7, %s481_s5  ;;  %p485_p6 = scmp.lt.u32.totalorder %s481_s5, %s623_s7 }
 0x2a4   :  { %p487_p7 = pnand %p485_p6, %p482_p5 }
 0x2a6   :  { %490 = shalt.err (!%p487_p7)
}
 0x2a7   :  { %382 = dma.vmem_to_hbm [thread:$0]  %s380_s0, 128, %s623_s7, [#allocation3]  }
 0x2a8   :  { %491 = dma.done.wait [#allocation3], 128  }
 0x2a9   :  { %492 = vsyncadd [#allocation3], 4294967168 }
 0x2aa   :  { %386 = vsyncpa [#allocation3], 1 }

</bundles_post_ra>
